<compile_context>
chip_gen: v7x
topology: tpu7x:2x2x1
jax: 0.10.0
libtpu: 0.0.40
codegen_flags: <defaults>
</compile_context>

<pallas_src>
import functools
import numpy as np
import jax
import jax.numpy as jnp
from jax.experimental import pallas as pl
from jax.experimental.pallas import tpu as pltpu


def make_pe_table(d_model: int, max_seq_length: int) -> jnp.ndarray:
    """Deterministic sin/cos positional-encoding table, shape [max_seq, d_model]."""
    position = np.arange(0, max_seq_length, dtype=np.float32)[:, None]          # [S, 1]
    div_term = np.exp(np.arange(0, d_model, 2, dtype=np.float32)
                      * (-np.log(10000.0) / d_model))                           # [D/2]
    pe = np.zeros((max_seq_length, d_model), dtype=np.float32)
    pe[:, 0::2] = np.sin(position * div_term)
    pe[:, 1::2] = np.cos(position * div_term)
    return jnp.asarray(pe)


# ---------------------------------------------------------------------------
# Kernels
# ---------------------------------------------------------------------------
def _add_pe_kernel(x_ref, pe_ref, o_ref):
    # x_ref: (BB, TS, D) or (B, TL); pe_ref: (1, TS, D) or (1, TL) -> broadcasts.
    o_ref[...] = (x_ref[...] + pe_ref[...]).astype(o_ref.dtype)


def _add_pe_dropout_kernel(x_ref, pe_ref, bits_ref, o_ref, *, keep_threshold, scale):
    y = x_ref[...] + pe_ref[...]
    # Integer-compare dropout: P(bits >= threshold) == 1 - p.
    keep = bits_ref[...] >= jnp.uint32(keep_threshold)
    o_ref[...] = jnp.where(keep, y * scale, jnp.zeros_like(y)).astype(o_ref.dtype)


# ---------------------------------------------------------------------------
# Tile choosers (cap per-block VMEM regardless of problem size)
# ---------------------------------------------------------------------------
def _choose_3d_tiles(B, S, D, itemsize, block_bytes):
    if B * S * D * itemsize <= block_bytes:
        return B, S                          # tiny problem: one block, one grid step
    ts = (block_bytes // (D * itemsize)) // 8 * 8
    ts = int(max(8, ts))
    if ts >= S:
        ts = S
    return 1, ts                             # ts is a multiple of 8 (or == S)


def _choose_flat_tile(B, N, itemsize, block_bytes):
    tl = (block_bytes // (B * itemsize)) // 128 * 128
    tl = int(max(128, tl))
    if tl >= N:
        tl = N                               # full (possibly < 128) -> still valid
    return tl                                # otherwise a multiple of 128


# ---------------------------------------------------------------------------
# Wrapper
# ---------------------------------------------------------------------------
def positional_encoding(x, pe_table, *, p: float = 0.1, training: bool = False,
                        rng_key=None, block_bytes: int = 2 * 1024 * 1024):
    """x: [B, S, D]; pe_table: [max_seq, D] float32. Returns dropout(x + pe[:S])."""
    B, S, D = x.shape
    max_seq, d_pe = pe_table.shape
    assert d_pe == D and max_seq >= S
    assert 0.0 <= p < 1.0, "dropout probability must be in [0, 1)"
    dtype = x.dtype
    itemsize = jnp.dtype(dtype).itemsize

    pe = pe_table[:S].astype(dtype)          # slice + pre-cast once in the wrapper

    use_dropout = training and p > 0.0
    bits = None
    if use_dropout:
        assert rng_key is not None, "rng_key required when training with p > 0"
        # TODO(synk): on TPU hardware, pltpu.prng_seed + pltpu.prng_random_bits would
        # generate this mask in-kernel (halving training-mode HBM traffic); kept as a
        # streamed input so the kernel also lowers in CPU/interpret environments.
        bits = jax.random.bits(rng_key, (B, S, D), dtype=jnp.uint32)
        keep_threshold = min(int(round(p * 2.0 ** 32)), 2 ** 32 - 1)
        scale = 1.0 / (1.0 - p)
        kernel = functools.partial(_add_pe_dropout_kernel,
                                   keep_threshold=keep_threshold, scale=scale)
    else:
        kernel = _add_pe_kernel

    n_flops = B * S * D * (3 if use_dropout else 1)
    n_bytes = 2 * B * S * D * itemsize + S * D * itemsize
    if use_dropout:
        n_bytes += B * S * D * 4
    cost = pl.CostEstimate(flops=n_flops, transcendentals=0, bytes_accessed=n_bytes)

    vmem_limit = 32 * 1024 * 1024            # safe on v5e/v6e/v7x; blocks are ~2 MiB

    if D % 128 == 0:
        # ---- 3-D path: D already lane-dense; tile (batch, seq). ----
        BB, TS = _choose_3d_tiles(B, S, D, itemsize, block_bytes)
        grid = (pl.cdiv(B, BB), pl.cdiv(S, TS))
        x_spec = pl.BlockSpec((BB, TS, D), lambda b, s: (b, s, 0))
        pe_spec = pl.BlockSpec((1, TS, D), lambda b, s: (0, s, 0))
        in_specs = [x_spec, pe_spec]
        operands = [x, pe[None]]
        if use_dropout:
            in_specs.append(pl.BlockSpec((BB, TS, D), lambda b, s: (b, s, 0)))
            operands.append(bits)
        return pl.pallas_call(
            kernel,
            out_shape=jax.ShapeDtypeStruct((B, S, D), dtype),
            grid=grid,
            in_specs=in_specs,
            out_specs=pl.BlockSpec((BB, TS, D), lambda b, s: (b, s, 0)),
            compiler_params=pltpu.CompilerParams(
                dimension_semantics=("parallel", "parallel"),
                vmem_limit_bytes=vmem_limit),
            cost_estimate=cost,
        )(*operands)
    else:
        # ---- Flattened path: fold (S, D) -> N so stores are lane-dense even for
        # ragged d_model. PE still broadcasts over batch after flattening. ----
        N = S * D
        TL = _choose_flat_tile(B, N, itemsize, block_bytes)
        grid = (pl.cdiv(N, TL),)
        x_spec = pl.BlockSpec((B, TL), lambda t: (0, t))
        pe_spec = pl.BlockSpec((1, TL), lambda t: (0, t))
        in_specs = [x_spec, pe_spec]
        operands = [x.reshape(B, N), pe.reshape(1, N)]
        if use_dropout:
            in_specs.append(pl.BlockSpec((B, TL), lambda t: (0, t)))
            operands.append(bits.reshape(B, N))
        out = pl.pallas_call(
            kernel,
            out_shape=jax.ShapeDtypeStruct((B, N), dtype),
            grid=grid,
            in_specs=in_specs,
            out_specs=pl.BlockSpec((B, TL), lambda t: (0, t)),
            compiler_params=pltpu.CompilerParams(
                dimension_semantics=("parallel",),
                vmem_limit_bytes=vmem_limit),
            cost_estimate=cost,
        )(*operands)
        return out.reshape(B, S, D)


# ---------------------------------------------------------------------------
if __name__ == "__main__":
    key = jax.random.PRNGKey(0)
    k1, k2, k3 = jax.random.split(key, 3)

    # Case 1: ragged D (not a multiple of 128) -> flattened lane-dense path.
    d_model, max_seq, B, S = 32, 16, 2, 8
    x = jax.random.normal(k1, (B, S, d_model), dtype=jnp.float32)
    pe_tab = make_pe_table(d_model, max_seq)
    y = jax.block_until_ready(positional_encoding(x, pe_tab, training=False))
    ref = x + pe_tab[:S][None, :, :]
    np.testing.assert_allclose(np.asarray(y), np.asarray(ref), rtol=1e-6, atol=1e-6)

    # Case 2: lane-dense D (multiple of 128) -> 3-D tiled path.
    d_model2, max_seq2, B2, S2 = 128, 32, 2, 16
    x2 = jax.random.normal(k2, (B2, S2, d_model2), dtype=jnp.float32)
    pe_tab2 = make_pe_table(d_model2, max_seq2)
    y2 = jax.block_until_ready(positional_encoding(x2, pe_tab2, training=False))
    ref2 = x2 + pe_tab2[:S2][None, :, :]
    np.testing.assert_allclose(np.asarray(y2), np.asarray(ref2), rtol=1e-6, atol=1e-6)

    # Case 3: training path (inverted dropout, p=0.1). Each output element must be
    # either 0 (dropped) or ref / (1-p) (kept).
    p = 0.1
    y3 = jax.block_until_ready(
        positional_encoding(x, pe_tab, p=p, training=True, rng_key=k3))
    y3n, refn = np.asarray(y3), np.asarray(ref)
    scaled = refn / (1.0 - p)
    ok = np.isclose(y3n, 0.0, atol=1e-6) | np.isclose(y3n, scaled, rtol=1e-4, atol=1e-5)
    assert ok.all()
    assert y3n.shape == (B, S, d_model)

    print("KERNEL_OK")
</pallas_src>

<mosaic_0001>
module attributes {stable_mosaic.version = 11 : i64} {
  func.func @_add_pe_kernel(%arg0: i32, %arg1: memref<2x256xf32, #tpu.memory_space<vmem>>, %arg2: memref<1x256xf32, #tpu.memory_space<vmem>>, %arg3: memref<2x256xf32, #tpu.memory_space<vmem>>) attributes {dimension_semantics = [#tpu.dimension_semantics<parallel>], iteration_bounds = array<i64: 1>, scalar_prefetch = 0 : i64, scratch_operands = 0 : i64, tpu.core_type = #tpu.core_type<tc>, window_params = [{transform_indices = @transform_0, window_bounds = array<i64: 2, 256>}, {transform_indices = @transform_1, window_bounds = array<i64: 1, 256>}, {transform_indices = @transform_2, window_bounds = array<i64: 2, 256>}]} {
    %c0 = arith.constant 0 : index
    %c0_0 = arith.constant 0 : index
    %0 = vector.load %arg1[%c0, %c0_0] : memref<2x256xf32, #tpu.memory_space<vmem>>, vector<2x256xf32>
    %c0_1 = arith.constant 0 : index
    %c0_2 = arith.constant 0 : index
    %1 = vector.load %arg2[%c0_1, %c0_2] : memref<1x256xf32, #tpu.memory_space<vmem>>, vector<1x256xf32>
    %2 = vector.broadcast %1 : vector<1x256xf32> to vector<2x256xf32>
    %3 = arith.addf %0, %2 : vector<2x256xf32>
    %c0_3 = arith.constant 0 : index
    %c0_4 = arith.constant 0 : index
    %4 = vector.load %arg3[%c0_3, %c0_4] : memref<2x256xf32, #tpu.memory_space<vmem>>, vector<2x256xf32>
    tpu.vector_store %arg3[%c0_3, %c0_4], %3 {strides = array<i32>} : memref<2x256xf32, #tpu.memory_space<vmem>>, vector<2x256xf32>,
    return
  }
  func.func @transform_0(%arg0: i32) -> (i32, i32) {
    %c0_i32 = arith.constant 0 : i32
    %c0_i32_0 = arith.constant 0 : i32
    return %c0_i32, %arg0 : i32, i32
  }
  func.func @transform_1(%arg0: i32) -> (i32, i32) {
    %c0_i32 = arith.constant 0 : i32
    %c0_i32_0 = arith.constant 0 : i32
    return %c0_i32, %arg0 : i32, i32
  }
  func.func @transform_2(%arg0: i32) -> (i32, i32) {
    %c0_i32 = arith.constant 0 : i32
    %c0_i32_0 = arith.constant 0 : i32
    return %c0_i32, %arg0 : i32, i32
  }
}

</mosaic_0001>

<bundles_post_ra>
// kernel: tpu_custom_call.1
= control target key start
LH: loop header
LB: loop body
LE: loop exit
PB: predicated region body
PF: predicated region fallthrough
CT: control target
= control target key end

     0   :  { %7 = vsyncpa [#allocation3], 0  ;;  %s157_s0 = inlined_call_operand.hbm [shape: f32[2,256], index: 0, kind: input, shape index: {}]   ;;  %s158_s1 = inlined_call_operand.vmem [shape: f32[1,256], index: 1, kind: input, shape index: {}]   ;;  %s159_s2 = inlined_call_operand.hbm [shape: f32[2,256], index: 2, kind: output, shape index: {}]  }
   0x1   :  { %8 = vsyncpa [#allocation4], 0  ;;  %s112_s9 = smov [#allocation2]   ;;  %s64_s13 = scalar_lea.hbm %s157_s0, 64 }
   0x2   :  { %s15_s10 = sshll.u32 %s112_s9, 4  ;;  %p65_p0 = scmp.ne.s32.totalorder %s157_s0, %s64_s13  ;;  %s16_s10 = int_to_ptr.vmem [resolvable:$true] %s15_s10 }
   0x3   :  { %p68_p1 = scmp.lt.u32.totalorder %s64_s13, %s157_s0 }
   0x5   :  { %p70_p2 = pnand %p68_p1, %p65_p0 }
   0x7   :  { %73 = shalt.err (!%p70_p2)
}
   0x8   :  { %s74_s18 = scalar_lea.vmem %s16_s10, 64  ;;  %p79_p4 = scmp.lt.s32.totalorder %s16_s10, %s16_s10 }
   0x9   :  { %p75_p3 = scmp.ne.s32.totalorder %s16_s10, %s74_s18  ;;  %p80_p5 = scmp.lt.s32.totalorder %s74_s18, %s74_s18 }
   0xb   :  { %p81_p6 = por %p80_p5, %p79_p4 }
   0xd   :  { %p82_p7 = pnand %p81_p6, %p75_p3 }
   0xf   :  { %85 = shalt.err (!%p82_p7)
}
  0x10   :  { %18 = dma.hbm_to_vmem [thread:$0]  %s157_s0, 64, %s16_s10, [#allocation3]  }
  0x11   :  { %108 = dma.done.wait [#allocation3], 64  }
  0x12   :  { %109 = vsyncadd [#allocation3], 4294967232  ;;  %v27_v0 = vlaneseq  ;;  %v113_v1 = vmov 1983009808   ;;  %v25_v7 = vld [vmem:[%s158_s1] sm:$0x3] }
  0x13   :  { %v37_v2 = vunpack.c.l.s4 %v113_v1  ;;  %v24_v12 = vld [vmem:[#allocation2] sm:$0xf]  ;;  %s114_s23 = smov [#allocation5]  }
  0x14   :  { %v28_v3 = vshrl.u32 %v27_v0, 7  ;;  %s52_s0 = sshll.u32 %s114_s23, 4  ;;  %s53_s0 = int_to_ptr.vmem [resolvable:$true] %s52_s0 }
  0x15   :  { %v38_v6 = vunpack.c.0.s8 %v37_v2  ;;  %s86_s24 = scalar_lea.vmem %s53_s0, 64  ;;  %p91_p9 = scmp.lt.s32.totalorder %s53_s0, %s53_s0 }
  0x16   :  { %v29_v4 = vsub.s32 0, %v28_v3  ;;  %v33_v5 = vsub.s32 1, %v28_v3  ;;  %p87_p8 = scmp.ne.s32.totalorder %s53_s0, %s86_s24  ;;  %p92_p10 = scmp.lt.s32.totalorder %s86_s24, %s86_s24 }
  0x17   :  { %v41_v10 = vsub.s32 %v38_v6, %v28_v3 }
  0x18   :  { %v30_v8 = vrot.slane %v25_v7, %v29_v4  ;;  %v34_v9 = vrot.slane %v25_v7, %v33_v5  ;;  %p93_p11 = por %p92_p10, %p91_p9 }
  0x1a   :  { %v35_v11 = vcombine.low %v30_v8, %v34_v9  ;;  %p94_p12 = pnand %p93_p11, %p87_p8 }
  0x1c   :  { %v42_v13 = vrot.slane %v35_v11, %v41_v10 }
  0x1e   :  { %v44_v14 = vadd.f32 %v42_v13, %v24_v12 }
  0x20   :  { %45 = vst [vmem:[#allocation5] sm:$0xf] %v44_v14 }
  0x21   :  { %97 = shalt.err (!%p94_p12)
}
  0x22   :  { %s98_s26 = scalar_lea.hbm %s159_s2, 64 }
  0x23   :  { %p99_p13 = scmp.ne.s32.totalorder %s159_s2, %s98_s26  ;;  %p102_p0 = scmp.lt.u32.totalorder %s98_s26, %s159_s2 }
  0x25   :  { %p104_p1 = pnand %p102_p0, %p99_p13 }
  0x27   :  { %107 = shalt.err (!%p104_p1)
}
  0x28   :  { %55 = dma.vmem_to_hbm [thread:$0]  %s53_s0, 64, %s159_s2, [#allocation4]  }
  0x29   :  { %110 = dma.done.wait [#allocation4], 64  }
  0x2a   :  { %111 = vsyncadd [#allocation4], 4294967232 }
  0x2b   :  { %59 = vsyncpa [#allocation3], 1 }
  0x2c   :  { %60 = vsyncpa [#allocation4], 1 }

</bundles_post_ra>
